<compile_context>
chip_gen: v6e
topology: v6e:2x2x1
jax: 0.10.0
libtpu: 0.0.40
codegen_flags: <defaults>
</compile_context>

<pallas_src>
import math
from functools import partial

import jax
import jax.numpy as jnp
from jax.experimental import pallas as pl
from jax.experimental.pallas import tpu as pltpu


def _round_up(x, m):
    return ((x + m - 1) // m) * m


def _mu_kernel(eta_ref, q_ref, c_ref, b_ref, out_ref):
    eta = eta_ref[0]                       # f32 scalar from SMEM
    q = q_ref[...].astype(jnp.float32)
    c = c_ref[...].astype(jnp.float32)
    b = b_ref[...].astype(jnp.float32)
    out_ref[...] = (b + eta * (q - c)).astype(out_ref.dtype)


def _choose_lane(total, sub_align):
    """Largest 128-multiple lane that divides `total`, preferring lanes that
    still leave >= sub_align rows (so blocks are fully aligned)."""
    candidates = (1024, 512, 256, 128)
    divisible = [c for c in candidates if total % c == 0]
    if not divisible:
        return 128
    for c in divisible:
        if total // c >= sub_align:
            return c
    return divisible[-1]


@partial(jax.jit, donate_argnums=(2,))
def multiplier_update(Q, C, beta, eta):
    """beta + eta * (Q - C), computed in a Pallas TPU kernel.

    Q, C, beta: arrays of identical shape/dtype (e.g. NCHW).
    eta: scalar (python float or 0-d array); traced, so changing eta does not
    recompile. beta's buffer is donated and reused for the output.
    """
    assert Q.shape == C.shape == beta.shape
    assert Q.dtype == C.dtype == beta.dtype
    orig_shape = Q.shape
    dtype = Q.dtype
    total = math.prod(orig_shape) if orig_shape else 1

    eta32 = jnp.asarray(eta, jnp.float32).reshape((1,))

    itemsize = jnp.dtype(dtype).itemsize
    # Sublane alignment of the second-to-last dim: 8 for 4B, 16 for 2B, 32 for 1B.
    sub_align = {4: 8, 2: 16, 1: 32}.get(itemsize, 8)

    lane = _choose_lane(total, sub_align)
    main = (total // lane) * lane          # lane-divisible prefix -> kernel
    tail = total - main                    # < lane leftover -> plain jnp

    q_flat = Q.reshape(-1)
    c_flat = C.reshape(-1)
    b_flat = beta.reshape(-1)

    parts = []

    if main > 0:
        rows = main // lane

        # 4 operands (3 in + 1 out) x 2 pipeline buffers within a 24 MiB budget.
        vmem_buffer_budget = 24 * 1024 * 1024
        row_tile = (vmem_buffer_budget // (4 * 2)) // (lane * itemsize)
        row_tile = max(sub_align, (row_tile // sub_align) * sub_align)
        # Never tile much beyond what the input needs.
        row_tile = min(row_tile, _round_up(rows, sub_align))
        # Keep the grid multi-step (up to 8) so v7x megacore + the DMA pipeline
        # have work to shard/overlap; single-block only for tiny tensors.
        desired_steps = min(8, max(1, rows // sub_align))
        if desired_steps > 1:
            cap = max(sub_align, ((rows // desired_steps) // sub_align) * sub_align)
            row_tile = min(row_tile, cap)

        grid = (pl.cdiv(rows, row_tile),)
        tile_spec = pl.BlockSpec((row_tile, lane), lambda i: (i, 0))

        if tail == 0:
            q2, c2, b2 = q_flat, c_flat, b_flat
        else:
            q2, c2, b2 = q_flat[:main], c_flat[:main], b_flat[:main]
        q2 = q2.reshape(rows, lane)
        c2 = c2.reshape(rows, lane)
        b2 = b2.reshape(rows, lane)

        out2 = pl.pallas_call(
            _mu_kernel,
            out_shape=jax.ShapeDtypeStruct((rows, lane), dtype),
            grid=grid,
            in_specs=[
                pl.BlockSpec(memory_space=pltpu.MemorySpace.SMEM),  # eta scalar
                tile_spec,  # Q
                tile_spec,  # C
                tile_spec,  # beta
            ],
            out_specs=tile_spec,
            input_output_aliases={3: 0},  # beta block aliased to output block
            compiler_params=pltpu.CompilerParams(
                dimension_semantics=("parallel",),
                vmem_limit_bytes=32 * 1024 * 1024,
            ),
            cost_estimate=pl.CostEstimate(
                flops=3 * main,
                transcendentals=0,
                bytes_accessed=4 * main * itemsize,
            ),
        )(eta32, q2, c2, b2)
        parts.append(out2.reshape(-1))

    if tail > 0:
        # Tiny (< lane) leftover: cheaper in plain jnp than padding all operands.
        qt = q_flat[main:].astype(jnp.float32)
        ct = c_flat[main:].astype(jnp.float32)
        bt = b_flat[main:].astype(jnp.float32)
        parts.append((bt + eta32[0] * (qt - ct)).astype(dtype))

    out_flat = parts[0] if len(parts) == 1 else jnp.concatenate(parts)
    return out_flat.reshape(orig_shape)


if __name__ == "__main__":
    # MultiplierUpdate has no learned parameters; eta is a constructor constant.
    eta = 0.1

    key = jax.random.PRNGKey(0)
    kq, kc, kb = jax.random.split(key, 3)

    # Small NCHW-shaped tensors consistent with an ADMM-on-conv setting.
    shape = (2, 4, 16, 16)
    Q = jax.random.normal(kq, shape, dtype=jnp.float32)
    C = jax.random.normal(kc, shape, dtype=jnp.float32)
    beta = jax.random.normal(kb, shape, dtype=jnp.float32)

    # Reference (plain JAX), materialized BEFORE the kernel call since beta's
    # buffer is donated to the kernel output.
    ref = jax.block_until_ready(beta + eta * (Q - C))

    out = multiplier_update(Q, C, beta, eta)
    out = jax.block_until_ready(out)

    assert out.shape == shape and out.dtype == jnp.float32
    assert jnp.allclose(out, ref, atol=1e-6, rtol=1e-6)

    print("KERNEL_OK")
</pallas_src>

<mosaic_0001>
module attributes {stable_mosaic.version = 11 : i64} {
  func.func @_mu_kernel(%arg0: i32, %arg1: memref<1xf32, #tpu.memory_space<smem>>, %arg2: memref<8x256xf32, #tpu.memory_space<vmem>>, %arg3: memref<8x256xf32, #tpu.memory_space<vmem>>, %arg4: memref<8x256xf32, #tpu.memory_space<vmem>>, %arg5: memref<8x256xf32, #tpu.memory_space<vmem>>) attributes {dimension_semantics = [#tpu.dimension_semantics<parallel>], iteration_bounds = array<i64: 1>, scalar_prefetch = 0 : i64, scratch_operands = 0 : i64, tpu.core_type = #tpu.core_type<tc>, window_params = [{transform_indices = @transform_0, window_bounds = array<i64: 1>}, {transform_indices = @transform_1, window_bounds = array<i64: 8, 256>}, {transform_indices = @transform_2, window_bounds = array<i64: 8, 256>}, {transform_indices = @transform_3, window_bounds = array<i64: 8, 256>}, {transform_indices = @transform_4, window_bounds = array<i64: 8, 256>}]} {
    %c0 = arith.constant 0 : index
    %0 = memref.load %arg1[%c0] : memref<1xf32, #tpu.memory_space<smem>>
    %c0_0 = arith.constant 0 : index
    %c0_1 = arith.constant 0 : index
    %1 = vector.load %arg2[%c0_0, %c0_1] : memref<8x256xf32, #tpu.memory_space<vmem>>, vector<8x256xf32>
    %c0_2 = arith.constant 0 : index
    %c0_3 = arith.constant 0 : index
    %2 = vector.load %arg3[%c0_2, %c0_3] : memref<8x256xf32, #tpu.memory_space<vmem>>, vector<8x256xf32>
    %c0_4 = arith.constant 0 : index
    %c0_5 = arith.constant 0 : index
    %3 = vector.load %arg4[%c0_4, %c0_5] : memref<8x256xf32, #tpu.memory_space<vmem>>, vector<8x256xf32>
    %4 = arith.subf %1, %2 : vector<8x256xf32>
    %5 = vector.broadcast %0 : f32 to vector<8x256xf32>
    %6 = arith.mulf %5, %4 : vector<8x256xf32>
    %7 = arith.addf %3, %6 : vector<8x256xf32>
    %c0_6 = arith.constant 0 : index
    %c0_7 = arith.constant 0 : index
    %8 = vector.load %arg5[%c0_6, %c0_7] : memref<8x256xf32, #tpu.memory_space<vmem>>, vector<8x256xf32>
    tpu.vector_store %arg5[%c0_6, %c0_7], %7 {strides = array<i32>} : memref<8x256xf32, #tpu.memory_space<vmem>>, vector<8x256xf32>,
    return
  }
  func.func @transform_0(%arg0: i32) -> i32 {
    %c0_i32 = arith.constant 0 : i32
    %c0_i32_0 = arith.constant 0 : i32
    return %c0_i32 : i32
  }
  func.func @transform_1(%arg0: i32) -> (i32, i32) {
    %c0_i32 = arith.constant 0 : i32
    %c0_i32_0 = arith.constant 0 : i32
    return %arg0, %c0_i32 : i32, i32
  }
  func.func @transform_2(%arg0: i32) -> (i32, i32) {
    %c0_i32 = arith.constant 0 : i32
    %c0_i32_0 = arith.constant 0 : i32
    return %arg0, %c0_i32 : i32, i32
  }
  func.func @transform_3(%arg0: i32) -> (i32, i32) {
    %c0_i32 = arith.constant 0 : i32
    %c0_i32_0 = arith.constant 0 : i32
    return %arg0, %c0_i32 : i32, i32
  }
  func.func @transform_4(%arg0: i32) -> (i32, i32) {
    %c0_i32 = arith.constant 0 : i32
    %c0_i32_0 = arith.constant 0 : i32
    return %arg0, %c0_i32 : i32, i32
  }
}

</mosaic_0001>

<bundles_post_ra>
// kernel: multiplier_update.1
= control target key start
LH: loop header
LB: loop body
LE: loop exit
PB: predicated region body
PF: predicated region fallthrough
CT: control target
= control target key end

     0   :  { %s90_s0 = inlined_call_operand.<no memory space> [shape: f32[1], index: 0, kind: input, shape index: {}]   ;;  %s91_s1 = inlined_call_operand.vmem [shape: f32[8,256], index: 1, kind: input, shape index: {}]   ;;  %s92_s2 = inlined_call_operand.vmem [shape: f32[8,256], index: 2, kind: input, shape index: {}]   ;;  %s93_s3 = inlined_call_operand.vmem [shape: f32[8,256], index: 3, kind: input, shape index: {}, may-alias: {3,4}]   ;;  %s94_s4 = inlined_call_operand.vmem [shape: f32[8,256], index: 4, kind: output, shape index: {}, may-alias: {3,4}]  }
   0x1   :  { %v19_v0 = vld [vmem:[%s91_s1] sm:$0xff]  ;;  %v27_v2 = vstv %s90_s0  ;;  %v20_v4 = vld [vmem:[%s91_s1 + $0x8] sm:$0xff] }
   0x2   :  { %v21_v1 = vld [vmem:[%s92_s2] sm:$0xff]  ;;  %v22_v5 = vld [vmem:[%s92_s2 + $0x8] sm:$0xff] }
   0x3   :  { %v25_v3 = vsub.f32 %v19_v0, %v21_v1  ;;  %v23_v6 = vld [vmem:[%s93_s3] sm:$0xff]  ;;  %v26_v7 = vsub.f32 %v20_v4, %v22_v5  ;;  %v24_v9 = vld [vmem:[%s93_s3 + $0x8] sm:$0xff] }
   0x5   :  { %v28_v8 = vmul.f32 %v27_v2, %v25_v3  ;;  %v29_v10 = vmul.f32 %v27_v2, %v26_v7 }
   0x7   :  { %v30_v11 = vadd.f32 %v28_v8, %v23_v6  ;;  %v31_v12 = vadd.f32 %v29_v10, %v24_v9 }
   0x9   :  { %32 = vst [vmem:[%s94_s4] sm:$0xff] %v30_v11  ;;  %33 = vst [vmem:[%s94_s4 + $0x8] sm:$0xff] %v31_v12 }

</bundles_post_ra>
